<compile_context>
chip_gen: v5e
topology: v5e:2x2
jax: 0.10.0
libtpu: 0.0.40
codegen_flags: <defaults>
</compile_context>

<pallas_src>
import functools

import jax
import jax.numpy as jnp
from jax import lax
from jax.experimental import pallas as pl
from jax.experimental.pallas import tpu as pltpu


def _label_smoothing_kernel(pred_ref, target_ref, out_ref, acc_ref, *,
                            confidence, smooth_val, n_valid):
    # pred_ref:   (C, TN) float  -- classes on sublanes, samples on lanes
    # target_ref: (1, TN) int32  -- class index per sample (lane-dense)
    # out_ref:    (1, 1)  float32 -- scalar loss (written once, last step)
    # acc_ref:    (1, 1)  float32 VMEM scratch -- running sum over samples
    i = pl.program_id(0)

    @pl.when(i == 0)
    def _():
        acc_ref[...] = jnp.zeros_like(acc_ref)

    logits = pred_ref[...].astype(jnp.float32)          # (C, TN)
    tgt = target_ref[...]                               # (1, TN) int32
    c, tn = logits.shape

    # Numerically stable log-softmax pieces along the class (sublane) axis.
    m = jnp.max(logits, axis=0, keepdims=True)          # (1, TN)
    shifted = logits - m                                 # (C, TN)
    lse = jnp.log(jnp.sum(jnp.exp(shifted), axis=0, keepdims=True))  # (1, TN)

    # sum_c(logp) = sum_c(shifted) - C * lse
    sum_shifted = jnp.sum(shifted, axis=0, keepdims=True)            # (1, TN)

    # logp[target] = shifted[target] - lse   (one masked reduce, no true_dist)
    class_ids = lax.broadcasted_iota(jnp.int32, (c, tn), 0)           # (C, TN)
    tgt_shifted = jnp.sum(jnp.where(class_ids == tgt, shifted, 0.0),
                          axis=0, keepdims=True)                      # (1, TN)

    per_sample = -(jnp.float32(smooth_val) * (sum_shifted - c * lse)
                   + jnp.float32(confidence - smooth_val)
                   * (tgt_shifted - lse))                             # (1, TN)

    # Mask padded samples in the (possibly partial) last tile.
    col = i * tn + lax.broadcasted_iota(jnp.int32, (1, tn), 1)
    per_sample = jnp.where(col < n_valid, per_sample, 0.0)

    acc_ref[...] += jnp.sum(per_sample, axis=1, keepdims=True)        # (1, 1)

    @pl.when(i == pl.num_programs(0) - 1)
    def _():
        out_ref[...] = acc_ref[...] * jnp.float32(1.0 / n_valid)


def label_smoothing_loss(pred, target, *, classes=3, smoothing=0.0,
                         block_n=32768):
    """Pallas implementation of LabelSmoothingLoss.forward.

    pred:   (N, C) float logits
    target: (N,)   integer class indices
    returns scalar float32 loss
    """
    n, c = pred.shape
    assert c == classes, "class dim of pred must equal `classes`"
    assert classes > 1, "smoothing/(classes-1) requires classes > 1"
    assert block_n % 128 == 0, "block_n must be a multiple of 128"

    confidence = 1.0 - smoothing
    smooth_val = smoothing / (classes - 1)

    # Lane-dense layout: classes -> sublanes, samples -> lanes.
    pred_t = pred.T                                   # (C, N)
    tgt = target.reshape(1, n).astype(jnp.int32)      # (1, N)

    if n <= block_n:
        tn, grid_n = n, 1           # block == full dim (no 128 constraint)
    else:
        tn = block_n                # multiple of 128
        grid_n = pl.cdiv(n, tn)     # remainder tile handled by in-kernel mask

    kernel = functools.partial(
        _label_smoothing_kernel,
        confidence=confidence,
        smooth_val=smooth_val,
        n_valid=n,
    )

    out = pl.pallas_call(
        kernel,
        out_shape=jax.ShapeDtypeStruct((1, 1), jnp.float32),
        grid_spec=pltpu.PrefetchScalarGridSpec(
            num_scalar_prefetch=0,
            grid=(grid_n,),
            in_specs=[
                pl.BlockSpec((c, tn), lambda i: (0, i)),   # (C, TN) logits
                pl.BlockSpec((1, tn), lambda i: (0, i)),   # (1, TN) targets
            ],
            out_specs=pl.BlockSpec((1, 1), lambda i: (0, 0)),
            scratch_shapes=[pltpu.VMEM((1, 1), jnp.float32)],
        ),
        compiler_params=pltpu.CompilerParams(
            dimension_semantics=("arbitrary",),   # sequential accumulation
            vmem_limit_bytes=32 * 1024 * 1024,    # safe on v5e/v6e/v7x
        ),
    )(pred_t, tgt)
    return out[0, 0]


def _reference_loss(pred, target, *, classes=3, smoothing=0.0):
    # pure-JAX reference mirroring the PyTorch module
    logp = jax.nn.log_softmax(pred.astype(jnp.float32), axis=-1)
    true_dist = jnp.full_like(logp, smoothing / (classes - 1))
    onehot = jax.nn.one_hot(target, classes, dtype=jnp.bool_)
    true_dist = jnp.where(onehot, 1.0 - smoothing, true_dist)
    return jnp.mean(jnp.sum(-true_dist * logp, axis=-1))


if __name__ == "__main__":
    N, CLASSES, SMOOTHING = 8, 3, 0.1

    key = jax.random.PRNGKey(0)
    k_pred, k_tgt = jax.random.split(key)
    pred = jax.random.normal(k_pred, (N, CLASSES), dtype=jnp.float32)
    target = jax.random.randint(k_tgt, (N,), 0, CLASSES, dtype=jnp.int32)

    loss = label_smoothing_loss(pred, target, classes=CLASSES,
                                smoothing=SMOOTHING)
    loss = jax.block_until_ready(loss)
    ref = _reference_loss(pred, target, classes=CLASSES, smoothing=SMOOTHING)
    assert jnp.allclose(loss, ref, rtol=1e-5, atol=1e-5), (loss, ref)

    # Also exercise the multi-tile path (grid > 1, remainder mask, accumulator).
    N2 = 300
    k_pred2, k_tgt2 = jax.random.split(k_tgt)
    pred2 = jax.random.normal(k_pred2, (N2, CLASSES), dtype=jnp.float32)
    target2 = jax.random.randint(k_tgt2, (N2,), 0, CLASSES, dtype=jnp.int32)
    loss2 = label_smoothing_loss(pred2, target2, classes=CLASSES,
                                 smoothing=SMOOTHING, block_n=128)
    loss2 = jax.block_until_ready(loss2)
    ref2 = _reference_loss(pred2, target2, classes=CLASSES, smoothing=SMOOTHING)
    assert jnp.allclose(loss2, ref2, rtol=1e-5, atol=1e-5), (loss2, ref2)

    print("KERNEL_OK")
</pallas_src>

<mosaic_0001>
module attributes {stable_mosaic.version = 11 : i64} {
  func.func @_label_smoothing_kernel(%arg0: i32, %arg1: memref<3x8xf32, #tpu.memory_space<vmem>>, %arg2: memref<1x8xi32, #tpu.memory_space<vmem>>, %arg3: memref<1x1xf32, #tpu.memory_space<vmem>>, %arg4: memref<1x1xf32, #tpu.memory_space<vmem>>) attributes {dimension_semantics = [#tpu.dimension_semantics<arbitrary>], iteration_bounds = array<i64: 1>, scalar_prefetch = 0 : i64, scratch_operands = 1 : i64, tpu.core_type = #tpu.core_type<tc>, window_params = [{transform_indices = @transform_0, window_bounds = array<i64: 3, 8>}, {transform_indices = @transform_1, window_bounds = array<i64: 1, 8>}, {pipeline_mode = #tpu.pipeline_mode<synchronous>, transform_indices = @transform_2, window_bounds = array<i64: 1, 1>}]} {
    %c0_i32 = arith.constant 0 : i32
    %0 = arith.cmpi eq, %arg0, %c0_i32 : i32
    %1 = arith.extui %0 : i1 to i32
    %c0_i32_0 = arith.constant 0 : i32
    %2 = arith.cmpi ne, %1, %c0_i32_0 : i32
    scf.if %2 {
      %cst_21 = arith.constant 0.000000e+00 : f32
      %49 = vector.broadcast %cst_21 : f32 to vector<1x1xf32>
      %c0_22 = arith.constant 0 : index
      %c0_23 = arith.constant 0 : index
      %50 = vector.load %arg4[%c0_22, %c0_23] : memref<1x1xf32, #tpu.memory_space<vmem>>, vector<1x1xf32>
      tpu.vector_store %arg4[%c0_22, %c0_23], %49 {strides = array<i32>} : memref<1x1xf32, #tpu.memory_space<vmem>>, vector<1x1xf32>,
    } else {
    }
    %c0 = arith.constant 0 : index
    %c0_1 = arith.constant 0 : index
    %3 = vector.load %arg1[%c0, %c0_1] : memref<3x8xf32, #tpu.memory_space<vmem>>, vector<3x8xf32>
    %c0_2 = arith.constant 0 : index
    %c0_3 = arith.constant 0 : index
    %4 = vector.load %arg2[%c0_2, %c0_3] : memref<1x8xi32, #tpu.memory_space<vmem>>, vector<1x8xi32>
    %cst = arith.constant dense<0xFF800000> : vector<8xf32>
    %5 = vector.multi_reduction <maximumf>, %3, %cst [0] : vector<3x8xf32> to vector<8xf32>
    %6 = vector.shape_cast %5 : vector<8xf32> to vector<1x8xf32>
    %7 = vector.broadcast %6 : vector<1x8xf32> to vector<3x8xf32>
    %8 = arith.subf %3, %7 : vector<3x8xf32>
    %9 = math.exp %8 : vector<3x8xf32>
    %cst_4 = arith.constant dense<0.000000e+00> : vector<8xf32>
    %10 = vector.multi_reduction <add>, %9, %cst_4 [0] : vector<3x8xf32> to vector<8xf32>
    %11 = vector.shape_cast %10 : vector<8xf32> to vector<1x8xf32>
    %12 = math.log %11 : vector<1x8xf32>
    %cst_5 = arith.constant dense<0.000000e+00> : vector<8xf32>
    %13 = vector.multi_reduction <add>, %8, %cst_5 [0] : vector<3x8xf32> to vector<8xf32>
    %14 = vector.shape_cast %13 : vector<8xf32> to vector<1x8xf32>
    %15 = tpu.iota {dimensions = array<i32: 0>} : vector<3x8xi32>
    %16 = vector.broadcast %4 : vector<1x8xi32> to vector<3x8xi32>
    %17 = arith.cmpi eq, %15, %16 : vector<3x8xi32>
    %cst_6 = arith.constant 0.000000e+00 : f32
    %18 = vector.broadcast %cst_6 : f32 to vector<3x8xf32>
    %19 = arith.select %17, %8, %18 : vector<3x8xi1>, vector<3x8xf32>
    %cst_7 = arith.constant dense<0.000000e+00> : vector<8xf32>
    %20 = vector.multi_reduction <add>, %19, %cst_7 [0] : vector<3x8xf32> to vector<8xf32>
    %21 = vector.shape_cast %20 : vector<8xf32> to vector<1x8xf32>
    %cst_8 = arith.constant 3.000000e+00 : f32
    %22 = vector.broadcast %cst_8 : f32 to vector<1x8xf32>
    %23 = arith.mulf %22, %12 : vector<1x8xf32>
    %24 = arith.subf %14, %23 : vector<1x8xf32>
    %cst_9 = arith.constant 5.000000e-02 : f32
    %25 = vector.broadcast %cst_9 : f32 to vector<1x8xf32>
    %26 = arith.mulf %25, %24 : vector<1x8xf32>
    %27 = arith.subf %21, %12 : vector<1x8xf32>
    %cst_10 = arith.constant 8.500000e-01 : f32
    %28 = vector.broadcast %cst_10 : f32 to vector<1x8xf32>
    %29 = arith.mulf %28, %27 : vector<1x8xf32>
    %30 = arith.addf %26, %29 : vector<1x8xf32>
    %cst_11 = arith.constant 0.000000e+00 : f32
    %31 = vector.broadcast %cst_11 : f32 to vector<1x8xf32>
    %32 = arith.subf %31, %30 : vector<1x8xf32>
    %c8_i32 = arith.constant 8 : i32
    %33 = arith.muli %arg0, %c8_i32 : i32
    %34 = tpu.iota {dimensions = array<i32: 1>} : vector<1x8xi32>
    %35 = vector.broadcast %33 : i32 to vector<1x8xi32>
    %36 = arith.addi %35, %34 : vector<1x8xi32>
    %c8_i32_12 = arith.constant 8 : i32
    %37 = vector.broadcast %c8_i32_12 : i32 to vector<1x8xi32>
    %38 = arith.cmpi slt, %36, %37 : vector<1x8xi32>
    %cst_13 = arith.constant 0.000000e+00 : f32
    %39 = vector.broadcast %cst_13 : f32 to vector<1x8xf32>
    %40 = arith.select %38, %32, %39 : vector<1x8xi1>, vector<1x8xf32>
    %c0_14 = arith.constant 0 : index
    %c0_15 = arith.constant 0 : index
    %41 = vector.load %arg4[%c0_14, %c0_15] : memref<1x1xf32, #tpu.memory_space<vmem>>, vector<1x1xf32>
    %cst_16 = arith.constant dense<0.000000e+00> : vector<1xf32>
    %42 = vector.multi_reduction <add>, %40, %cst_16 [1] : vector<1x8xf32> to vector<1xf32>
    %43 = vector.shape_cast %42 : vector<1xf32> to vector<1x1xf32>
    %44 = arith.addf %41, %43 : vector<1x1xf32>
    %c0_17 = arith.constant 0 : index
    %c0_18 = arith.constant 0 : index
    %45 = vector.load %arg4[%c0_17, %c0_18] : memref<1x1xf32, #tpu.memory_space<vmem>>, vector<1x1xf32>
    tpu.vector_store %arg4[%c0_17, %c0_18], %44 {strides = array<i32>} : memref<1x1xf32, #tpu.memory_space<vmem>>, vector<1x1xf32>,
    %c0_i32_19 = arith.constant 0 : i32
    %46 = arith.cmpi eq, %arg0, %c0_i32_19 : i32
    %47 = arith.extui %46 : i1 to i32
    %c0_i32_20 = arith.constant 0 : i32
    %48 = arith.cmpi ne, %47, %c0_i32_20 : i32
    scf.if %48 {
      %c0_21 = arith.constant 0 : index
      %c0_22 = arith.constant 0 : index
      %49 = vector.load %arg4[%c0_21, %c0_22] : memref<1x1xf32, #tpu.memory_space<vmem>>, vector<1x1xf32>
      %cst_23 = arith.constant 1.250000e-01 : f32
      %50 = vector.broadcast %cst_23 : f32 to vector<1x1xf32>
      %51 = arith.mulf %49, %50 : vector<1x1xf32>
      %c0_24 = arith.constant 0 : index
      %c0_25 = arith.constant 0 : index
      %52 = vector.load %arg3[%c0_24, %c0_25] : memref<1x1xf32, #tpu.memory_space<vmem>>, vector<1x1xf32>
      tpu.vector_store %arg3[%c0_24, %c0_25], %51 {strides = array<i32>} : memref<1x1xf32, #tpu.memory_space<vmem>>, vector<1x1xf32>,
    } else {
    }
    return
  }
  func.func @transform_0(%arg0: i32) -> (i32, i32) {
    %c0_i32 = arith.constant 0 : i32
    %c0_i32_0 = arith.constant 0 : i32
    return %c0_i32, %arg0 : i32, i32
  }
  func.func @transform_1(%arg0: i32) -> (i32, i32) {
    %c0_i32 = arith.constant 0 : i32
    %c0_i32_0 = arith.constant 0 : i32
    return %c0_i32, %arg0 : i32, i32
  }
  func.func @transform_2(%arg0: i32) -> (i32, i32) {
    %c0_i32 = arith.constant 0 : i32
    %c0_i32_0 = arith.constant 0 : i32
    %c0_i32_1 = arith.constant 0 : i32
    return %c0_i32, %c0_i32_0 : i32, i32
  }
}

</mosaic_0001>

<bundles_post_ra>
// kernel: tpu_custom_call.1
= control target key start
LH: loop header
LB: loop body
LE: loop exit
PB: predicated region body
PF: predicated region fallthrough
CT: control target
= control target key end

     0   :  { %7 = vsyncpa [#allocation4], 0  ;;  %s255_s0 = inlined_call_operand.hbm [shape: f32[3,8], index: 0, kind: input, shape index: {}]   ;;  %s256_s1 = inlined_call_operand.hbm [shape: s32[1,8], index: 1, kind: input, shape index: {}]   ;;  %s257_s2 = inlined_call_operand.hbm [shape: f32[1,1], index: 2, kind: output, shape index: {}]  }
   0x1   :  { %8 = vsyncpa [#allocation7], 0 }
   0x2   :  { %9 = vsyncpa [#allocation5], 0  ;;  %s15_s11 = sshll.u32 %s255_s0, 4  ;;  %s220_s12 = smov [#allocation3]   ;;  %s16_s11 = int_to_ptr.hbm [resolvable:$true] %s15_s11 }
   0x3   :  { %s17_s13 = sshll.u32 %s220_s12, 4  ;;  %s26_s16 = sshll.u32 %s256_s1, 4  ;;  %s18_s13 = int_to_ptr.vmem [resolvable:$true] %s17_s13  ;;  %s27_s16 = int_to_ptr.hbm [resolvable:$true] %s26_s16 }
   0x4   :  { %20 = dma.hbm_to_vmem [thread:$0]  %s16_s11, 64, %s18_s13, [#allocation4]  }
   0x5   :  { %s221_s17 = smov [#allocation6]  }
   0x6   :  { %s28_s18 = sshll.u32 %s221_s17, 4  ;;  %s29_s18 = int_to_ptr.vmem [resolvable:$true] %s28_s18 }
   0x7   :  { %31 = dma.hbm_to_vmem [thread:$0]  %s27_s16, 16, %s29_s18, [#allocation7]  }
   0x8   :  { %214 = dma.done.wait [#allocation4], 64  }
   0x9   :  { %215 = vsyncadd [#allocation4], 4294967232 }
   0xa   :  { %216 = dma.done.wait [#allocation7], 16  }
   0xb   :  { %217 = vsyncadd [#allocation7], 4294967280  ;;  %vm48_vm0 = vcmask 59392   ;;  %v46_v0 = vld [vmem:[#allocation3] sm:$0x7]  ;;  %v75_v5 = vlaneseq  ;;  %vm44_vm2 = vcmask 0  }
   0xc   :  { %v49_v1 = vsel %vm48_vm0, %v46_v0, -inf  ;;  %v137_v9 = vld [vmem:[#allocation6] ss:$0 sm:$0xff]  ;;  %v222_v23 = vmov 0.0   ;;  %vm102_vm4 = vcmask 64512   ;;  %s223_s0 = smov [#allocation8]  }
   0xd   :  { %v50_v2 = vrot.slane %v49_v1, 4  ;;  %v76_v8 = vshrl.u32 %v75_v5, 7  ;;  %45 = vst.msk [vmem:[#allocation2] sm:$0x1] %vm44_vm2, %v222_v23  ;;  %v96_v43 = vand.u32 127, %v75_v5  ;;  %s120_s1 = sshll.u32 %s223_s0, 4  ;;  %s121_s1 = int_to_ptr.vmem [resolvable:$true] %s120_s1 }
   0xe   :  { %s122_s21 = sshll.u32 %s257_s2, 4  ;;  %s123_s21 = int_to_ptr.hbm [resolvable:$true] %s122_s21 }
   0xf   :  { %v51_v3 = vmax.f32 %v49_v1, %v50_v2  ;;  %vm78_vm1 = vcmp.eq.s32.totalorder %v76_v8, %v137_v9  ;;  %vm99_vm3 = vcmp.lt.s32.totalorder %v96_v43, 8 }
  0x11   :  { %v52_v4 = vrot.slane %v51_v3, 2 }
  0x13   :  { %v53_v6 = vmax.f32 %v51_v3, %v52_v4 }
  0x14   :  { %v101_v49 = vld [vmem:[#allocation2] sm:$0x1] }
  0x15   :  { %v54_v7 = vrot.slane %v53_v6, 1 }
  0x17   :  { %v55_v10 = vmax.f32 %v53_v6, %v54_v7 }
  0x19   :  { %v56_v11 = vsub.f32 %v46_v0, %v55_v10 }
  0x1b   :  { %v57_v12 = vmul.f32 1.442695, %v56_v11  ;;  %v79_v13 = vsel %vm78_vm1, %v56_v11, 0.0  ;;  %v68_v15 = vsel %vm48_vm0, %v56_v11, 0.0 }
  0x1c   :  { %v80_v14 = vsel %vm48_vm0, %v79_v13, 0.0  ;;  %v69_v19 = vrot.slane %v68_v15, 4 }
  0x1d   :  { %138 = vpow2.f32 %v57_v12  ;;  %v81_v16 = vrot.slane %v80_v14, 4 }
  0x1e   :  { %v70_v24 = vadd.f32 %v69_v19, %v68_v15 }
  0x1f   :  { %v82_v21 = vadd.f32 %v81_v16, %v80_v14 }
  0x20   :  { %v71_v28 = vrot.slane %v70_v24, 2 }
  0x21   :  { %v83_v26 = vrot.slane %v82_v21, 2 }
  0x22   :  { %v72_v32 = vadd.f32 %v71_v28, %v70_v24 }
  0x23   :  { %v139_v17 = vpop.eup %138  ;;  %v84_v30 = vadd.f32 %v83_v26, %v82_v21 }
  0x24   :  { %v59_v18 = vsel %vm48_vm0, %v139_v17, 0.0  ;;  %v73_v34 = vrot.slane %v72_v32, 1 }
  0x25   :  { %v60_v20 = vrot.slane %v59_v18, 4  ;;  %v85_v33 = vrot.slane %v84_v30, 1 }
  0x26   :  { %v74_v38 = vadd.f32 %v73_v34, %v72_v32 }
  0x27   :  { %v61_v22 = vadd.f32 %v60_v20, %v59_v18  ;;  %v86_v35 = vadd.f32 %v85_v33, %v84_v30 }
  0x29   :  { %v62_v25 = vrot.slane %v61_v22, 2 }
  0x2b   :  { %v63_v27 = vadd.f32 %v62_v25, %v61_v22 }
  0x2d   :  { %v64_v29 = vrot.slane %v63_v27, 1 }
  0x2f   :  { %v65_v31 = vadd.f32 %v64_v29, %v63_v27 }
  0x31   :  { %140 = vlog2.f32 %v65_v31 }
  0x37   :  { %v141_v36 = vpop.eup %140 }
  0x38   :  { %v67_v37 = vmul.f32 0.6931472, %v141_v36 }
  0x3a   :  { %v87_v39 = vmul.f32 3.0, %v67_v37  ;;  %v90_v40 = vsub.f32 %v86_v35, %v67_v37 }
  0x3c   :  { %v88_v41 = vsub.f32 %v74_v38, %v87_v39  ;;  %v91_v42 = vmul.f32 0.85, %v90_v40 }
  0x3e   :  { %v89_v44 = vmul.f32 0.05, %v88_v41 }
  0x40   :  { %v92_v45 = vadd.f32 %v91_v42, %v89_v44 }
  0x42   :  { %v93_v46 = vsub.f32 0.0, %v92_v45 }
  0x44   :  { %v100_v47 = vsel %vm99_vm3, %v93_v46, 0.0 }
  0x45   :  { %v103_v48 = vsel %vm102_vm4, %v100_v47, 0.0 }
  0x46   :  { %104 = vadd.xlane.f32.xlu0 %v103_v48 }
  0xb9   :  { %v105_v50 = vpop.xlane.xlu0 %104 }
  0xba   :  { %v106_v51 = vadd.f32 %v105_v50, %v101_v49 }
  0xbc   :  { %108 = vst.msk [vmem:[#allocation2] sm:$0x1] %vm44_vm2, %v106_v51 }
  0xc3   :  { %v112_v52 = vld [vmem:[#allocation2] sm:$0x1] }
  0xc4   :  { %v113_v53 = vmul.f32 0.125, %v112_v52 }
  0xc6   :  { %114 = vst.msk [vmem:[#allocation8] sm:$0x1] %vm44_vm2, %v113_v53 }
  0xc7   :  { %125 = dma.vmem_to_hbm [thread:$0]  %s121_s1, 16, %s123_s21, [#allocation5]  }
  0xc8   :  { %218 = dma.done.wait [#allocation5], 16  }
  0xc9   :  { %219 = vsyncadd [#allocation5], 4294967280 }
  0xca   :  { %130 = vsyncpa [#allocation4], 1 }
  0xcb   :  { %131 = vsyncpa [#allocation7], 1 }
  0xcc   :  { %132 = vsyncpa [#allocation5], 1 }

</bundles_post_ra>
